<compile_context>
chip_gen: v5e
topology: v5e:2x2
jax: 0.10.0
libtpu: 0.0.40
codegen_flags: <defaults>
</compile_context>

<pallas_src>
import jax
import jax.numpy as jnp
from jax.experimental import pallas as pl
from jax.experimental.pallas import tpu as pltpu


def temporal_decay_kernel(x_ref, w_ref, b_ref, o_ref):
    # x_ref: (tm, K_eff) bf16, w_ref: (N_eff, K_eff) bf16  -> contract on dim 1
    # of both (no weight transpose materialized anywhere).  f32 accumulate.
    z = jax.lax.dot_general(
        x_ref[...], w_ref[...],
        dimension_numbers=(((1,), (1,)), ((), ())),
        preferred_element_type=jnp.float32,
    )
    z = z + b_ref[...]                       # (1, N_eff) broadcast, f32
    o_ref[...] = jnp.exp(-jnp.maximum(z, 0.0)).astype(o_ref.dtype)


def _pick_row_tile(m_rows):
    # Big tiles amortize the ~0.35us/step pipeline overhead; keep >=2 grid
    # steps when possible so both TensorCores on a v7x chip get work.
    for cand in (1024, 512, 256, 128, 64, 32, 16, 8):
        if cand <= m_rows and m_rows % cand == 0 and m_rows // cand >= 2:
            return cand
    return m_rows


def temporal_decay(x, weight, bias, *, tm=None, compute_dtype=jnp.bfloat16):
    """exp(-relu(x @ W^T + b)).  x: [..., d_in], W: [d_out, d_in], b: [d_out]."""
    d_in = x.shape[-1]
    d_out = weight.shape[0]
    assert weight.shape[1] == d_in

    lead_shape = x.shape[:-1]
    M = 1
    for s in lead_shape:
        M *= s
    x2 = x.reshape(M, d_in)

    # ---- lane-density packing factor ----------------------------------------
    P = 1
    if d_out < 128 and 128 % d_out == 0:
        P = 128 // d_out
        while P > 1 and M % P != 0:
            P //= 2

    if P > 1:
        Mp = M // P
        # Free reshape: P consecutive rows concatenated along the lane axis.
        x_eff = x2.reshape(Mp, P * d_in)
        # Block-diagonal weight, kept in PyTorch [out, in] layout per block.
        eye = jnp.eye(P, dtype=weight.dtype)
        w_eff = jnp.einsum("pq,oi->poqi", eye, weight).reshape(P * d_out, P * d_in)
        b_eff = jnp.tile(bias, P).reshape(1, P * d_out)
    else:
        Mp = M
        x_eff = x2
        w_eff = weight                      # [d_out, d_in], no transpose needed
        b_eff = bias.reshape(1, d_out)

    K_eff, N_eff = P * d_in, P * d_out

    # bf16 matmul operands (MXU native on v5e/v6e/v7x), f32 bias/epilogue.
    x_eff = x_eff.astype(compute_dtype)
    w_eff = w_eff.astype(compute_dtype)
    b_eff = b_eff.astype(jnp.float32)

    if tm is None:
        tm = _pick_row_tile(Mp)
    assert Mp % tm == 0, "row count must be divisible by the row tile"
    grid = (Mp // tm,)

    itemsize = jnp.dtype(compute_dtype).itemsize
    cost = pl.CostEstimate(
        flops=2 * M * d_in * d_out,
        transcendentals=M * d_out,
        bytes_accessed=(M * d_in * itemsize          # x read
                        + N_eff * K_eff * itemsize   # weight read
                        + N_eff * 4                  # bias read
                        + M * d_out * 4),            # output write (f32)
    )

    out = pl.pallas_call(
        temporal_decay_kernel,
        out_shape=jax.ShapeDtypeStruct((Mp, N_eff), x.dtype),
        grid_spec=pltpu.PrefetchScalarGridSpec(
            num_scalar_prefetch=0,
            grid=grid,
            in_specs=[
                pl.BlockSpec((tm, K_eff), lambda i: (i, 0)),
                # Grid-invariant operands (weight / bias).
                # TODO(synk): for very large d_in/d_out, add
                # pipeline_mode=pl.Buffered(1) here so the invariant weight is
                # not double-buffered (frees VMEM for bigger row tiles).
                pl.BlockSpec((N_eff, K_eff), lambda i: (0, 0)),
                pl.BlockSpec((1, N_eff), lambda i: (0, 0)),
            ],
            out_specs=pl.BlockSpec((tm, N_eff), lambda i: (i, 0)),
        ),
        compiler_params=pltpu.CompilerParams(
            dimension_semantics=("parallel",),
        ),
        cost_estimate=cost,
    )(x_eff, w_eff, b_eff)

    # Free reshape back to the natural [..., d_out] layout.
    return out.reshape(lead_shape + (d_out,))


if __name__ == "__main__":
    key = jax.random.PRNGKey(0)
    k_x, k_w, k_b = jax.random.split(key, 3)

    batch, seq, input_dim, output_dim = 16, 8, 32, 32

    x = jax.random.normal(k_x, (batch, seq, input_dim), dtype=jnp.float32)
    # nn.Linear parameter shapes: W [out, in], b [out].
    weight = jax.random.normal(k_w, (output_dim, input_dim), dtype=jnp.float32) * 0.1
    bias = jax.random.normal(k_b, (output_dim,), dtype=jnp.float32) * 0.1

    out = temporal_decay(x, weight, bias)
    jax.block_until_ready(out)

    # Reference (same semantics as the PyTorch module, f32 throughout).
    ref = jnp.exp(-jnp.maximum(x @ weight.T + bias, 0.0))
    assert out.shape == ref.shape
    err = float(jnp.max(jnp.abs(out - ref)))
    # bf16 matmul inputs with f32 accumulation -> small quantization error.
    assert err < 2e-2, f"mismatch vs reference: max abs err {err}"

    print("KERNEL_OK")
</pallas_src>

<mosaic_0001>
module attributes {stable_mosaic.version = 11 : i64} {
  func.func @temporal_decay_kernel(%arg0: i32, %arg1: memref<16x128xbf16, #tpu.memory_space<vmem>>, %arg2: memref<128x128xbf16, #tpu.memory_space<vmem>>, %arg3: memref<1x128xf32, #tpu.memory_space<vmem>>, %arg4: memref<16x128xf32, #tpu.memory_space<vmem>>) attributes {dimension_semantics = [#tpu.dimension_semantics<parallel>], iteration_bounds = array<i64: 2>, scalar_prefetch = 0 : i64, scratch_operands = 0 : i64, tpu.core_type = #tpu.core_type<tc>, window_params = [{transform_indices = @transform_0, window_bounds = array<i64: 16, 128>}, {pipeline_mode = #tpu.pipeline_mode<synchronous>, transform_indices = @transform_1, window_bounds = array<i64: 128, 128>}, {pipeline_mode = #tpu.pipeline_mode<synchronous>, transform_indices = @transform_2, window_bounds = array<i64: 1, 128>}, {transform_indices = @transform_3, window_bounds = array<i64: 16, 128>}]} {
    %c0 = arith.constant 0 : index
    %c0_0 = arith.constant 0 : index
    %0 = vector.load %arg1[%c0, %c0_0] : memref<16x128xbf16, #tpu.memory_space<vmem>>, vector<16x128xbf16>
    %c0_1 = arith.constant 0 : index
    %c0_2 = arith.constant 0 : index
    %1 = vector.load %arg2[%c0_1, %c0_2] : memref<128x128xbf16, #tpu.memory_space<vmem>>, vector<128x128xbf16>
    %cst = arith.constant dense<0.000000e+00> : vector<16x128xf32>
    %2 = tpu.matmul %0, %1, %cst {dimension_numbers = #tpu.dot_dimension_numbers<[1], [1], [0], [0], [0, 0, 1, 0], [], []>} : vector<16x128xbf16>, vector<128x128xbf16>, vector<16x128xf32> -> vector<16x128xf32>
    %c0_3 = arith.constant 0 : index
    %c0_4 = arith.constant 0 : index
    %3 = vector.load %arg3[%c0_3, %c0_4] : memref<1x128xf32, #tpu.memory_space<vmem>>, vector<1x128xf32>
    %4 = vector.broadcast %3 : vector<1x128xf32> to vector<16x128xf32>
    %5 = arith.addf %2, %4 : vector<16x128xf32>
    %cst_5 = arith.constant 0.000000e+00 : f32
    %6 = vector.broadcast %cst_5 : f32 to vector<16x128xf32>
    %7 = arith.maximumf %5, %6 : vector<16x128xf32>
    %cst_6 = arith.constant 0.000000e+00 : f32
    %8 = vector.broadcast %cst_6 : f32 to vector<16x128xf32>
    %9 = arith.subf %8, %7 : vector<16x128xf32>
    %10 = math.exp %9 : vector<16x128xf32>
    %c0_7 = arith.constant 0 : index
    %c0_8 = arith.constant 0 : index
    %11 = vector.load %arg4[%c0_7, %c0_8] : memref<16x128xf32, #tpu.memory_space<vmem>>, vector<16x128xf32>
    tpu.vector_store %arg4[%c0_7, %c0_8], %10 {strides = array<i32>} : memref<16x128xf32, #tpu.memory_space<vmem>>, vector<16x128xf32>,
    return
  }
  func.func @transform_0(%arg0: i32) -> (i32, i32) {
    %c0_i32 = arith.constant 0 : i32
    %c0_i32_0 = arith.constant 0 : i32
    return %arg0, %c0_i32 : i32, i32
  }
  func.func @transform_1(%arg0: i32) -> (i32, i32) {
    %c0_i32 = arith.constant 0 : i32
    %c0_i32_0 = arith.constant 0 : i32
    %c0_i32_1 = arith.constant 0 : i32
    return %c0_i32, %c0_i32_0 : i32, i32
  }
  func.func @transform_2(%arg0: i32) -> (i32, i32) {
    %c0_i32 = arith.constant 0 : i32
    %c0_i32_0 = arith.constant 0 : i32
    %c0_i32_1 = arith.constant 0 : i32
    return %c0_i32, %c0_i32_0 : i32, i32
  }
  func.func @transform_3(%arg0: i32) -> (i32, i32) {
    %c0_i32 = arith.constant 0 : i32
    %c0_i32_0 = arith.constant 0 : i32
    return %arg0, %c0_i32 : i32, i32
  }
}

</mosaic_0001>

<bundles_post_ra>
// kernel: tpu_custom_call.1
= control target key start
LH: loop header
LB: loop body
LE: loop exit
PB: predicated region body
PF: predicated region fallthrough
CT: control target
= control target key end

     0   :  { %8 = vsyncpa [#allocation3], 0  ;;  %s843_s0 = inlined_call_operand.hbm [shape: bf16[32,128], index: 0, kind: input, shape index: {}]   ;;  %s844_s1 = inlined_call_operand.hbm [shape: bf16[128,128], index: 1, kind: input, shape index: {}]   ;;  %s845_s2 = inlined_call_operand.vmem [shape: f32[1,128], index: 2, kind: input, shape index: {}]   ;;  %s846_s3 = inlined_call_operand.hbm [shape: f32[32,128], index: 3, kind: output, shape index: {}]  }
   0x1   :  { %10 = vsyncpa [#allocation3 + $0x1], 0 }
   0x2   :  { %11 = vsyncpa [#allocation6], 0 }
   0x3   :  { %12 = vsyncpa [#allocation4], 0 }
   0x4   :  { %14 = vsyncpa [#allocation4 + $0x1], 0  ;;  %s695_s12 = smov 0   ;;  %s697_s13 = smov 0  }
   0x5   :  { %s699_s14 = smov 0   ;;  %s701_s15 = smov 0  }
   0x6 LB: > { %s716_s16 = sadd.s32 4294967295, %s668_s15   ;;  %s409_s17 = sadd.s32 4294967294, %s668_s15   ;;  %s668_s15 = sphi %s701_s15, %s856_s15   ;;  %s664_s14 = sphi %s699_s14, %s855_s14   ;;  %s660_s13 = sphi %s697_s13, %s854_s13   ;;  %s656_s12 = sphi %s695_s12, %s853_s12  }
   0x7   : > { %p40_p0 = scmp.ne.s32.totalorder %s660_s13, %s656_s12  ;;  %p41_p1 = scmp.eq.s32.totalorder %s716_s16, 0 }
   0x8   : > { %p106_p2 = scmp.eq.s32.totalorder %s716_s16, 1  ;;  %p112_p3 = scmp.eq.s32.totalorder %s409_s17, 1 }
   0x9   : > { %p725_p4 = por %p41_p1, %p40_p0  ;;  %p410_p5 = scmp.ge.s32.totalorder %s668_s15, 1 }
   0xa   : > { %p730_p6 = por %p112_p3, %p40_p0  ;;  %p119_p7 = scmp.lt.s32.totalorder %s668_s15, 3 }
   0xb   : > { %s130_s22 = sshll.u32 %s844_s1, 4  ;;  %s670_s24 = smov [#allocation5]   ;;  %s131_s22 = int_to_ptr.hbm [resolvable:$true] %s130_s22 }
   0xc   : > { %p738_p8 = pnand %p410_p5, %p119_p7  ;;  %s132_s25 = sshll.u32 %s670_s24, 4  ;;  %s133_s25 = int_to_ptr.vmem [resolvable:$true] %s132_s25 }
   0xd   : > { %s748_s26 = sadd.s32 1, %s668_s15   ;;  %s671_s27 = smov 64  }
   0xe   : > { %p480_p9 = pneg %p738_p8  ;;  %s672_s28 = smov 4  }
   0xf   : > { %s24_s29 = ssub.s32 %s668_s15, %s748_s26  ;;  %s27_s30 = sadd.s32 1, %s664_s14 }
  0x10   : > { %p481_p10 = pnand %p480_p9, %p41_p1  ;;  %p25_p12 = scmp.eq.s32.totalorder %s24_s29, 0 }
  0x11   : > { %p34_p13 = scmp.ne.s32.totalorder %s664_s14, %s660_s13  ;;  %p35_p0 = scmp.eq.s32.totalorder %s668_s15, 0 }
  0x12   : > { %483 = dma.hbm_to_vmem [thread:$0]  (!%p481_p10), %s131_s22, 1024, %s133_s25, [#allocation6], %s671_s27, %s671_s27, %s672_s28  }
  0x13   : > { %s760_s4 = scalar_select %p25_p12, %s664_s14, %s27_s30  }
  0x14   : > { %p764_p3 = por %p106_p2, %p34_p13  ;;  %p493_p5 = scmp.lt.s32.totalorder %s668_s15, 2 }
  0x15   : > { %s149_s6 = sand.u32 1, %s664_s14   ;;  %s461_s7 = sshll.u32 %s668_s15, 3 }
  0x16   : > { %p36_p7 = por %p35_p0, %p34_p13  ;;  %s413_s8 = sshll.u32 %s149_s6, 3 }
  0x17   : > { %s158_s11 = scalar_lea.hbm %s843_s0, %s461_s7  ;;  %s153_s20 = scalar_lea.vmem [#allocation2], %s413_s8 }
  0x18   : > { %s159_s17 = sshll.u32 %s158_s11, 4  ;;  %s161_s21 = sshll.u32 %s153_s20, 4  ;;  %s160_s17 = int_to_ptr.hbm [resolvable:$true] %s159_s17  ;;  %s162_s21 = int_to_ptr.vmem [resolvable:$true] %s161_s21 }
  0x19   : > { %p774_p9 = pnand %p493_p5, %p36_p7  ;;  %s150_s24 = scalar_lea.sflag [#allocation3], %s149_s6 }
  0x1a   : > { %s568_s25 = sshra.s32 %s160_s17, 4  ;;  %s575_s8 = scalar_lea.hbm %s843_s0, 16  ;;  %s569_s25 = int_to_ptr.hbm [resolvable:$true] %s568_s25 }
  0x1b   : > { %s570_s29 = scalar_lea.hbm %s569_s25, 8  ;;  %p572_p10 = pneg %p774_p9 }
  0x1c   : > { %p571_p2 = scmp.ne.s32.totalorder %s569_s25, %s570_s29  ;;  %p576_p0 = scmp.lt.s32.totalorder %s569_s25, %s843_s0 }
  0x1d   : > { %p577_p5 = scmp.lt.s32.totalorder %s575_s8, %s570_s29 }
  0x1e   : > { %p573_p12 = pnand %p572_p10, %p571_p2 }
  0x1f   : > { %p578_p7 = por %p577_p5, %p576_p0 }
  0x20   : > { %p574_p13 = pneg %p573_p12 }
  0x22   : > { %p579_p11 = pnand %p578_p7, %p574_p13 }
  0x24   : > { %582 = shalt.err (!%p579_p11)
}
  0x25   : > { %487 = dma.hbm_to_vmem [thread:$0]  (!%p774_p9), %s160_s17, 128, %s162_s21, %s150_s24, %s671_s27, %s671_s27, %s672_s28  }
  0x26   : > { %173 = sbr.rel (%p738_p8) target bundleno = 263 (0x107), region = 32  ;;  %s794_s6 = sand.u32 (!%p738_p8), 1, %s660_s13  }
  0x27   : > { %s417_s11 = sshll.u32 (!%p738_p8), %s794_s6, 3  ;;  %s176_s20 = scalar_lea.sflag (!%p738_p8), [#allocation3], %s794_s6 }
  0x28   : > { %s179_s25 = scalar_lea.vmem (!%p738_p8), [#allocation2], %s417_s11 }
  0x2b   : > { %643 = dma.done.wait (%p725_p4), %s176_s20, 128  }
  0x2c   : > { %645 = vsyncadd (%p725_p4), %s176_s20, 4294967168 }
  0x2d   : > { %647 = dma.done.wait (%p41_p1), [#allocation6], 1024  }
  0x2e   : > { %649 = vsyncadd (%p41_p1), [#allocation6], 4294966272  ;;  %v470_v0 = vld [vmem:[#allocation5 + $0x38] sm:$0xff]  ;;  %v469_v1 = vld [vmem:[#allocation5 + $0x30] sm:$0xff]  ;;  %s419_s27 = sshll.u32 %s794_s6, 4  ;;  %s471_s28 = sshll.u32 %s716_s16, 4 }
  0x2f   : > { %286 = vmatpush.bf16.xpose.msra.mxu0 %v470_v0  ;;  %v468_v2 = vld [vmem:[#allocation5 + $0x28] sm:$0xff]  ;;  %v467_v3 = vld [vmem:[#allocation5 + $0x20] sm:$0xff]  ;;  %v466_v4 = vld [vmem:[#allocation5 + $0x18] sm:$0xff]  ;;  %s322_s22 = scalar_lea.hbm %s846_s3, %s471_s28  ;;  %s207_s24 = scalar_lea.vmem [#allocation7], %s419_s27 }
  0x30   : > { %v465_v5 = vld [vmem:[#allocation5 + $0x10] sm:$0xff]  ;;  %v464_v6 = vld [vmem:[#allocation5 + $0x8] sm:$0xff]  ;;  %v463_v7 = vld [vmem:[#allocation5] sm:$0xff]  ;;  %s323_s29 = sshll.u32 %s207_s24, 4  ;;  %s325_s30 = sshll.u32 %s322_s22, 4  ;;  %s324_s29 = int_to_ptr.vmem [resolvable:$true] %s323_s29  ;;  %s326_s30 = int_to_ptr.hbm [resolvable:$true] %s325_s30 }
  0x31   : > { %v462_v8 = vld [vmem:[%s179_s25] sm:$0xff]  ;;  %s311_s7 = scalar_lea.sflag [#allocation4], %s794_s6  ;;  %s612_s8 = sshra.s32 %s326_s30, 4  ;;  %s613_s8 = int_to_ptr.hbm [resolvable:$true] %s612_s8 }
  0x32   : > { %v533_v9 = vld [vmem:[%s845_s2] ss:$0 sm:$0xff]  ;;  %s614_s16 = scalar_lea.hbm %s613_s8, 16  ;;  %s618_s11 = scalar_lea.hbm %s846_s3, 32 }
  0x33   : > { %p615_p1 = scmp.ne.s32.totalorder %s613_s8, %s614_s16  ;;  %p619_p11 = scmp.lt.s32.totalorder %s613_s8, %s846_s3 }
  0x34   : > { %p620_p9 = scmp.lt.s32.totalorder %s618_s11, %s614_s16 }
  0x35   : > { %p616_p4 = pnand %p615_p1, %p764_p3 }
  0x36   : > { %p621_p2 = por %p620_p9, %p619_p11 }
  0x37   : > { %287 = vmatpush.bf16.xpose.msra.mxu0 %v469_v1  ;;  %p617_p8 = pneg %p616_p4 }
  0x39   : > { %p622_p10 = pnand %p621_p2, %p617_p8 }
  0x3f   : > { %288 = vmatpush.bf16.xpose.msra.mxu0 %v468_v2 }
  0x47   : > { %289 = vmatpush.bf16.xpose.msra.mxu0 %v467_v3 }
  0x4f   : > { %290 = vmatpush.bf16.xpose.msra.mxu0 %v466_v4 }
  0x57   : > { %291 = vmatpush.bf16.xpose.msra.mxu0 %v465_v5 }
  0x5f   : > { %292 = vmatpush.bf16.xpose.msra.mxu0 %v464_v6 }
  0x67   : > { %293 = vmatpush.bf16.xpose.msra.mxu0 %v463_v7 }
  0x6e   : > { %294 = vmatmul.bf16.vlgmr.msra.gmra.mxu0 %v462_v8 }
  0xeb   : > { %v295_v10 = vpop.f32.mrf.mxu0 }
  0xec   : > { %v296_v11 = vadd.f32 %v533_v9, %v295_v10 }
  0xee   : > { %v300_v12 = vmax.f32 %v296_v11, 0.0 }
  0xf0   : > { %v302_v13 = vsub.f32 0.0, %v300_v12 }
  0xf2   : > { %v304_v14 = vmul.f32 1.442695, %v302_v13 }
  0xf3   : > { %v297_v15 = vpop.f32.mrf.mxu0 }
  0xf4   : > { %534 = vpow2.f32 %v304_v14  ;;  %v298_v16 = vadd.f32 %v533_v9, %v297_v15 }
  0xf6   : > { %v301_v17 = vmax.f32 %v298_v16, 0.0 }
  0xf8   : > { %v303_v18 = vsub.f32 0.0, %v301_v17 }
  0xfa   : > { %v535_v19 = vpop.eup %534  ;;  %v306_v20 = vmul.f32 1.442695, %v303_v18 }
  0xfb   : > { %308 = vst [vmem:[%s207_s24] sm:$0xff] %v535_v19 }
  0xfc   : > { %536 = vpow2.f32 %v306_v20 }
 0x102   : > { %v537_v21 = vpop.eup %536 }
 0x103   : > { %309 = vst [vmem:[%s207_s24 + $0x8] sm:$0xff] %v537_v21 }
 0x104   : > { %625 = shalt.err (!%p622_p10)
}
 0x105   : > { %s673_s6 = smov 128   ;;  %s674_s18 = smov 8  }
 0x106   : > { %478 = dma.vmem_to_hbm [thread:$0]  (%p764_p3), %s324_s29, 256, %s326_s30, %s311_s7, %s673_s6, %s673_s6, %s674_s18  }
 0x107 PF: > { %s340_s23 = sand.u32 1, %s656_s12   ;;  %p852_p12 = scmp.ge.s32.totalorder %s668_s15, 2 }
 0x108   : > { %s341_s27 = scalar_lea.sflag [#allocation4], %s340_s23 }
 0x109   : > { %p489_p13 = pnand %p852_p12, %p730_p6 }
 0x10b   : > { %p490_p0 = pneg %p489_p13 }
 0x10d   : > { %651 = dma.done.wait (%p490_p0), %s341_s27, 256  }
 0x10e   : > { %653 = vsyncadd (%p490_p0), %s341_s27, 4294967040  ;;  %p17_p5 = scmp.ge.s32.totalorder %s748_s26, 4   ;;  %s853_s12 = smov %s660_s13 }
 0x10f   : > { %s854_s13 = smov %s664_s14  ;;  %s855_s14 = smov %s760_s4 }
 0x110   : > { %s856_s15 = smov %s748_s26  ;;  %19 = sbr.rel (!%p17_p5) target bundleno = 6 (0x6), region = 81 }
 0x115   :  { %347 = vsyncpa [#allocation3], 1 }
 0x116   :  { %349 = vsyncpa [#allocation3 + $0x1], 1 }
 0x117   :  { %350 = vsyncpa [#allocation6], 1 }
 0x118   :  { %351 = vsyncpa [#allocation4], 1 }
 0x119   :  { %353 = vsyncpa [#allocation4 + $0x1], 1 }

</bundles_post_ra>
